<compile_context>
chip_gen: v7x
topology: tpu7x:2x2x1
jax: 0.10.0
libtpu: 0.0.40
codegen_flags: <defaults>
</compile_context>

<pallas_src>
import functools

import jax
import jax.numpy as jnp
from jax.experimental import pallas as pl
from jax.experimental.pallas import tpu as pltpu


def _round_up(x, m):
    return (x + m - 1) // m * m


def _critic_kernel(fs_ref, fa_ref, w1s_ref, w1a_ref, b1_ref,
                   w2_ref, b2_ref, w3_ref, b3_ref, o_ref):
    # fc1 with the concat folded in:  h1 = xs @ W1s + xa @ W1a + b1
    h1 = jnp.dot(fs_ref[...], w1s_ref[...], preferred_element_type=jnp.float32)
    h1 = h1 + jnp.dot(fa_ref[...], w1a_ref[...],
                      preferred_element_type=jnp.float32)
    h1 = jnp.maximum(h1 + b1_ref[...], 0.0)           # f32 bias + ReLU on VPU

    # fc2 (128 -> 64); cast back to the weight dtype for the MXU, accumulate f32.
    h2 = jnp.dot(h1.astype(w2_ref.dtype), w2_ref[...],
                 preferred_element_type=jnp.float32)
    h2 = jnp.maximum(h2 + b2_ref[...], 0.0)           # f32 bias + ReLU on VPU

    # fc3 (64 -> 1): an N=1 MXU matmul would use 1/256 of the systolic array,
    # so do it as a VPU multiply + XLU lane reduction (free-ish slots) instead.
    w3_row = w3_ref[...].astype(jnp.float32)          # [1, 64]
    q = jnp.sum(h2 * w3_row, axis=-1, keepdims=True)  # [tile, 1]
    o_ref[...] = (q + b3_ref[0, 0]).astype(o_ref.dtype)


@functools.partial(jax.jit, static_argnames=("block_b",))
def critic_forward(full_state, full_action, prepared_params, *, block_b=256):
    """Pallas-backed forward pass of the Critic MLP.

    `prepared_params` comes from `prepare_critic_params` (W1 pre-split,
    W3 pre-transposed, weights optionally bf16).
    """
    assert block_b % 8 == 0, "block_b must be a multiple of 8 (f32 sublane)"
    w1s, w1a, b1, w2, b2, w3, b3 = prepared_params

    B, Ds = full_state.shape
    Da = full_action.shape[1]
    H1 = w1s.shape[1]
    H2 = w2.shape[1]

    # Stream activations in the same (possibly bf16) dtype as the weights.
    x_dtype = w1s.dtype
    fs = full_state.astype(x_dtype)
    fa = full_action.astype(x_dtype)

    # Pad the batch to a multiple of 8 (sublane granularity); rarely triggers
    # for training-scale batches.  Uneven final *tiles* (B8 % block) are handled
    # by Pallas' boundary masking, so no full-tile padding is needed.
    B8 = _round_up(B, 8)
    if B8 != B:
        fs = jnp.pad(fs, ((0, B8 - B), (0, 0)))
        fa = jnp.pad(fa, ((0, B8 - B), (0, 0)))

    blk = min(block_b, B8)
    grid = (pl.cdiv(B8, blk),)

    out = pl.pallas_call(
        _critic_kernel,
        out_shape=jax.ShapeDtypeStruct((B8, 1), jnp.float32),
        grid=grid,
        in_specs=[
            # streamed activations: one batch tile per grid step
            pl.BlockSpec((blk, Ds), lambda i: (i, 0)),
            pl.BlockSpec((blk, Da), lambda i: (i, 0)),
            # weights / biases: constant index maps -> stay VMEM-resident
            pl.BlockSpec((Ds, H1), lambda i: (0, 0)),
            pl.BlockSpec((Da, H1), lambda i: (0, 0)),
            pl.BlockSpec((1, H1), lambda i: (0, 0)),
            pl.BlockSpec((H1, H2), lambda i: (0, 0)),
            pl.BlockSpec((1, H2), lambda i: (0, 0)),
            pl.BlockSpec((1, H2), lambda i: (0, 0)),
            # b3 is a single scalar -> SMEM
            pl.BlockSpec((1, 1), lambda i: (0, 0),
                         memory_space=pltpu.MemorySpace.SMEM),
        ],
        out_specs=pl.BlockSpec((blk, 1), lambda i: (i, 0)),
        compiler_params=pltpu.CompilerParams(
            dimension_semantics=("parallel",)),   # megacore sharding on v7x
    )(fs, fa, w1s, w1a, b1, w2, b2, w3, b3)

    return out[:B]


def init_critic_params(key, full_state_dim, full_action_dim):
    """Deterministic init matching nn.Linear's default U(-1/sqrt(fan_in), +...).

    Layout matches the PyTorch module (weights stored as [in, out]):
      (w1 [Din,128], b1 [1,128], w2 [128,64], b2 [1,64], w3 [64,1], b3 [1,1])
    """
    dims = [(full_state_dim + full_action_dim, 128), (128, 64), (64, 1)]
    params = []
    for (fan_in, fan_out) in dims:
        key, kw, kb = jax.random.split(key, 3)
        bound = 1.0 / jnp.sqrt(float(fan_in))
        w = jax.random.uniform(kw, (fan_in, fan_out), jnp.float32, -bound, bound)
        b = jax.random.uniform(kb, (1, fan_out), jnp.float32, -bound, bound)
        params.extend([w, b])
    return tuple(params)


def prepare_critic_params(params, full_state_dim, dtype=None):
    """One-time parameter prep for the kernel.

    * Splits W1 into the state / action halves (concat folded into the kernel).
    * Transposes W3 [64,1] -> row [1,64] for the VPU-mul + reduce final layer.
    * Optionally casts the weights to `dtype` (e.g. bf16 on v6e/v7x) — the MXU
      still accumulates in f32; biases stay f32 for the VPU elementwise math.
    """
    w1, b1, w2, b2, w3, b3 = params
    w1s = w1[:full_state_dim]
    w1a = w1[full_state_dim:]
    w3_row = w3.T
    if dtype is not None:
        w1s, w1a, w2, w3_row = (t.astype(dtype) for t in (w1s, w1a, w2, w3_row))
    b1 = b1.astype(jnp.float32)
    b2 = b2.astype(jnp.float32)
    b3 = b3.astype(jnp.float32)
    return (w1s, w1a, b1, w2, b2, w3_row, b3)


def _reference_forward(full_state, full_action, params):
    w1, b1, w2, b2, w3, b3 = params
    x = jnp.concatenate([full_state, full_action], axis=1)
    x = jnp.maximum(x @ w1 + b1, 0.0)
    x = jnp.maximum(x @ w2 + b2, 0.0)
    return x @ w3 + b3


if __name__ == "__main__":
    full_state_dim = 24
    full_action_dim = 8

    key = jax.random.PRNGKey(0)
    kp, ks, ka, ks2, ka2 = jax.random.split(key, 5)

    params = init_critic_params(kp, full_state_dim, full_action_dim)
    prepped_f32 = prepare_critic_params(params, full_state_dim)

    # --- small batch (inference-style), f32 ---
    batch = 4
    fs = jax.random.normal(ks, (batch, full_state_dim), jnp.float32)
    fa = jax.random.normal(ka, (batch, full_action_dim), jnp.float32)

    out = jax.block_until_ready(critic_forward(fs, fa, prepped_f32))
    ref = _reference_forward(fs, fa, params)
    assert out.shape == (batch, 1)
    assert jnp.allclose(out, ref, atol=1e-4, rtol=1e-4), "f32 small-batch mismatch"

    # --- training-scale batch (exercises the batch grid + uneven last tile) ---
    batch2 = 500
    fs2 = jax.random.normal(ks2, (batch2, full_state_dim), jnp.float32)
    fa2 = jax.random.normal(ka2, (batch2, full_action_dim), jnp.float32)

    out2 = jax.block_until_ready(critic_forward(fs2, fa2, prepped_f32))
    ref2 = _reference_forward(fs2, fa2, params)
    assert out2.shape == (batch2, 1)
    assert jnp.allclose(out2, ref2, atol=1e-4, rtol=1e-4), "f32 large-batch mismatch"

    # --- bf16 weights + streamed activations (v6e/v7x bandwidth opt), f32 accum ---
    prepped_bf16 = prepare_critic_params(params, full_state_dim,
                                         dtype=jnp.bfloat16)
    out3 = jax.block_until_ready(critic_forward(fs2, fa2, prepped_bf16))
    assert out3.shape == (batch2, 1)
    assert jnp.allclose(out3, ref2, atol=1e-1, rtol=1e-1), "bf16 mismatch"

    print("KERNEL_OK")
</pallas_src>

<mosaic_0001>
module attributes {stable_mosaic.version = 11 : i64} {
  func.func @_critic_kernel(%arg0: i32, %arg1: memref<8x24xf32, #tpu.memory_space<vmem>>, %arg2: memref<8x8xf32, #tpu.memory_space<vmem>>, %arg3: memref<24x128xf32, #tpu.memory_space<vmem>>, %arg4: memref<8x128xf32, #tpu.memory_space<vmem>>, %arg5: memref<1x128xf32, #tpu.memory_space<vmem>>, %arg6: memref<128x64xf32, #tpu.memory_space<vmem>>, %arg7: memref<1x64xf32, #tpu.memory_space<vmem>>, %arg8: memref<1x64xf32, #tpu.memory_space<vmem>>, %arg9: memref<1x1xf32, #tpu.memory_space<smem>>, %arg10: memref<8x1xf32, #tpu.memory_space<vmem>>) attributes {dimension_semantics = [#tpu.dimension_semantics<parallel>], iteration_bounds = array<i64: 1>, scalar_prefetch = 0 : i64, scratch_operands = 0 : i64, tpu.core_type = #tpu.core_type<tc>, window_params = [{transform_indices = @transform_0, window_bounds = array<i64: 8, 24>}, {transform_indices = @transform_1, window_bounds = array<i64: 8, 8>}, {pipeline_mode = #tpu.pipeline_mode<synchronous>, transform_indices = @transform_2, window_bounds = array<i64: 24, 128>}, {pipeline_mode = #tpu.pipeline_mode<synchronous>, transform_indices = @transform_3, window_bounds = array<i64: 8, 128>}, {pipeline_mode = #tpu.pipeline_mode<synchronous>, transform_indices = @transform_4, window_bounds = array<i64: 1, 128>}, {pipeline_mode = #tpu.pipeline_mode<synchronous>, transform_indices = @transform_5, window_bounds = array<i64: 128, 64>}, {pipeline_mode = #tpu.pipeline_mode<synchronous>, transform_indices = @transform_6, window_bounds = array<i64: 1, 64>}, {pipeline_mode = #tpu.pipeline_mode<synchronous>, transform_indices = @transform_7, window_bounds = array<i64: 1, 64>}, {transform_indices = @transform_8, window_bounds = array<i64: 1, 1>}, {transform_indices = @transform_9, window_bounds = array<i64: 8, 1>}]} {
    %c0 = arith.constant 0 : index
    %c0_0 = arith.constant 0 : index
    %0 = vector.load %arg1[%c0, %c0_0] : memref<8x24xf32, #tpu.memory_space<vmem>>, vector<8x24xf32>
    %c0_1 = arith.constant 0 : index
    %c0_2 = arith.constant 0 : index
    %1 = vector.load %arg3[%c0_1, %c0_2] : memref<24x128xf32, #tpu.memory_space<vmem>>, vector<24x128xf32>
    %cst = arith.constant dense<0.000000e+00> : vector<8x128xf32>
    %2 = tpu.matmul %0, %1, %cst {dimension_numbers = #tpu.dot_dimension_numbers<[1], [0], [0], [1], [0, 0, 1, 1], [], []>} : vector<8x24xf32>, vector<24x128xf32>, vector<8x128xf32> -> vector<8x128xf32>
    %c0_3 = arith.constant 0 : index
    %c0_4 = arith.constant 0 : index
    %3 = vector.load %arg2[%c0_3, %c0_4] : memref<8x8xf32, #tpu.memory_space<vmem>>, vector<8x8xf32>
    %c0_5 = arith.constant 0 : index
    %c0_6 = arith.constant 0 : index
    %4 = vector.load %arg4[%c0_5, %c0_6] : memref<8x128xf32, #tpu.memory_space<vmem>>, vector<8x128xf32>
    %cst_7 = arith.constant dense<0.000000e+00> : vector<8x128xf32>
    %5 = tpu.matmul %3, %4, %cst_7 {dimension_numbers = #tpu.dot_dimension_numbers<[1], [0], [0], [1], [0, 0, 1, 1], [], []>} : vector<8x8xf32>, vector<8x128xf32>, vector<8x128xf32> -> vector<8x128xf32>
    %6 = arith.addf %2, %5 : vector<8x128xf32>
    %c0_8 = arith.constant 0 : index
    %c0_9 = arith.constant 0 : index
    %7 = vector.load %arg5[%c0_8, %c0_9] : memref<1x128xf32, #tpu.memory_space<vmem>>, vector<1x128xf32>
    %8 = vector.broadcast %7 : vector<1x128xf32> to vector<8x128xf32>
    %9 = arith.addf %6, %8 : vector<8x128xf32>
    %cst_10 = arith.constant 0.000000e+00 : f32
    %10 = vector.broadcast %cst_10 : f32 to vector<8x128xf32>
    %11 = arith.maximumf %9, %10 : vector<8x128xf32>
    %c0_11 = arith.constant 0 : index
    %c0_12 = arith.constant 0 : index
    %12 = vector.load %arg6[%c0_11, %c0_12] : memref<128x64xf32, #tpu.memory_space<vmem>>, vector<128x64xf32>
    %cst_13 = arith.constant dense<0.000000e+00> : vector<8x64xf32>
    %13 = tpu.matmul %11, %12, %cst_13 {dimension_numbers = #tpu.dot_dimension_numbers<[1], [0], [0], [1], [0, 0, 1, 1], [], []>} : vector<8x128xf32>, vector<128x64xf32>, vector<8x64xf32> -> vector<8x64xf32>
    %c0_14 = arith.constant 0 : index
    %c0_15 = arith.constant 0 : index
    %14 = vector.load %arg7[%c0_14, %c0_15] : memref<1x64xf32, #tpu.memory_space<vmem>>, vector<1x64xf32>
    %15 = vector.broadcast %14 : vector<1x64xf32> to vector<8x64xf32>
    %16 = arith.addf %13, %15 : vector<8x64xf32>
    %cst_16 = arith.constant 0.000000e+00 : f32
    %17 = vector.broadcast %cst_16 : f32 to vector<8x64xf32>
    %18 = arith.maximumf %16, %17 : vector<8x64xf32>
    %c0_17 = arith.constant 0 : index
    %c0_18 = arith.constant 0 : index
    %19 = vector.load %arg8[%c0_17, %c0_18] : memref<1x64xf32, #tpu.memory_space<vmem>>, vector<1x64xf32>
    %20 = vector.broadcast %19 : vector<1x64xf32> to vector<8x64xf32>
    %21 = arith.mulf %18, %20 : vector<8x64xf32>
    %cst_19 = arith.constant dense<0.000000e+00> : vector<8xf32>
    %22 = vector.multi_reduction <add>, %21, %cst_19 [1] : vector<8x64xf32> to vector<8xf32>
    %23 = vector.shape_cast %22 : vector<8xf32> to vector<8x1xf32>
    %c0_20 = arith.constant 0 : index
    %c0_21 = arith.constant 0 : index
    %24 = memref.load %arg9[%c0_20, %c0_21] : memref<1x1xf32, #tpu.memory_space<smem>>
    %25 = vector.broadcast %24 : f32 to vector<8x1xf32>
    %26 = arith.addf %23, %25 : vector<8x1xf32>
    %c0_22 = arith.constant 0 : index
    %c0_23 = arith.constant 0 : index
    %27 = vector.load %arg10[%c0_22, %c0_23] : memref<8x1xf32, #tpu.memory_space<vmem>>, vector<8x1xf32>
    tpu.vector_store %arg10[%c0_22, %c0_23], %26 {strides = array<i32>} : memref<8x1xf32, #tpu.memory_space<vmem>>, vector<8x1xf32>,
    return
  }
  func.func @transform_0(%arg0: i32) -> (i32, i32) {
    %c0_i32 = arith.constant 0 : i32
    %c0_i32_0 = arith.constant 0 : i32
    return %arg0, %c0_i32 : i32, i32
  }
  func.func @transform_1(%arg0: i32) -> (i32, i32) {
    %c0_i32 = arith.constant 0 : i32
    %c0_i32_0 = arith.constant 0 : i32
    return %arg0, %c0_i32 : i32, i32
  }
  func.func @transform_2(%arg0: i32) -> (i32, i32) {
    %c0_i32 = arith.constant 0 : i32
    %c0_i32_0 = arith.constant 0 : i32
    %c0_i32_1 = arith.constant 0 : i32
    return %c0_i32, %c0_i32_0 : i32, i32
  }
  func.func @transform_3(%arg0: i32) -> (i32, i32) {
    %c0_i32 = arith.constant 0 : i32
    %c0_i32_0 = arith.constant 0 : i32
    %c0_i32_1 = arith.constant 0 : i32
    return %c0_i32, %c0_i32_0 : i32, i32
  }
  func.func @transform_4(%arg0: i32) -> (i32, i32) {
    %c0_i32 = arith.constant 0 : i32
    %c0_i32_0 = arith.constant 0 : i32
    %c0_i32_1 = arith.constant 0 : i32
    return %c0_i32, %c0_i32_0 : i32, i32
  }
  func.func @transform_5(%arg0: i32) -> (i32, i32) {
    %c0_i32 = arith.constant 0 : i32
    %c0_i32_0 = arith.constant 0 : i32
    %c0_i32_1 = arith.constant 0 : i32
    return %c0_i32, %c0_i32_0 : i32, i32
  }
  func.func @transform_6(%arg0: i32) -> (i32, i32) {
    %c0_i32 = arith.constant 0 : i32
    %c0_i32_0 = arith.constant 0 : i32
    %c0_i32_1 = arith.constant 0 : i32
    return %c0_i32, %c0_i32_0 : i32, i32
  }
  func.func @transform_7(%arg0: i32) -> (i32, i32) {
    %c0_i32 = arith.constant 0 : i32
    %c0_i32_0 = arith.constant 0 : i32
    %c0_i32_1 = arith.constant 0 : i32
    return %c0_i32, %c0_i32_0 : i32, i32
  }
  func.func @transform_8(%arg0: i32) -> (i32, i32) {
    %c0_i32 = arith.constant 0 : i32
    %c0_i32_0 = arith.constant 0 : i32
    %c0_i32_1 = arith.constant 0 : i32
    return %c0_i32, %c0_i32_0 : i32, i32
  }
  func.func @transform_9(%arg0: i32) -> (i32, i32) {
    %c0_i32 = arith.constant 0 : i32
    %c0_i32_0 = arith.constant 0 : i32
    return %arg0, %c0_i32 : i32, i32
  }
}

</mosaic_0001>

<bundles_post_ra>
// kernel: critic_forward.1
= control target key start
LH: loop header
LB: loop body
LE: loop exit
PB: predicated region body
PF: predicated region fallthrough
CT: control target
= control target key end

     0   :  { %vm39_vm0 = vcmask 64512   ;;  %v418_v0 = vmov 0.0   ;;  %vm419_vm1 = vmmov 0   ;;  %v420_v5 = vmov 0.0|0.0   ;;  %s555_s3 = inlined_call_operand.vmem [shape: f32[8,128], index: 3, kind: input, shape index: {}]   ;;  %s556_s1 = inlined_call_operand.vmem [shape: f32[8,8], index: 1, kind: input, shape index: {}]   ;;  %s557_s2 = inlined_call_operand.vmem [shape: f32[24,128], index: 2, kind: input, shape index: {}]   ;;  %s558_s5 = inlined_call_operand.vmem [shape: f32[128,64], index: 5, kind: input, shape index: {}]   ;;  %s559_s0 = inlined_call_operand.vmem [shape: f32[8,24], index: 0, kind: input, shape index: {}]   ;;  %s560_s4 = inlined_call_operand.vmem [shape: f32[1,128], index: 4, kind: input, shape index: {}]   ;;  %s561_s6 = inlined_call_operand.vmem [shape: f32[1,64], index: 6, kind: input, shape index: {}]   ;;  %s562_s7 = inlined_call_operand.vmem [shape: f32[1,64], index: 7, kind: input, shape index: {}]   ;;  %s563_s8 = inlined_call_operand.<no memory space> [shape: f32[1,1], index: 8, kind: input, shape index: {}]   ;;  %s564_s9 = inlined_call_operand.vmem [shape: f32[8,1], index: 9, kind: output, shape index: {}]  }
   0x1   :  { %339 = vmatprep.subr.mxu1 %v418_v0  ;;  %v38_v1 = vld [vmem:[%s555_s3] sm:$0xff]  ;;  %341 = vmatprep.mubr.msk.f32.mxu1 %vm419_vm1, %v418_v0  ;;  %v35_v4 = vld [vmem:[%s557_s2 + $0x8] sm:$0xff]  ;;  %v198_v9 = vld [vmem:[%s558_s5 + $0x10] sm:$0xff]  ;;  %vm113_vm2 = vcmask 195584   ;;  %vm298_vm3 = vcmask 523264   ;;  %v303_v49 = vstv %s563_s8  ;;  %vm305_vm4 = vcmask 7168  }
   0x2   :  { %v37_v2 = vld [vmem:[%s556_s1] sm:$0xff]  ;;  %340 = vmatpush3.msra.mxu1 %v38_v1  ;;  %391 = vmatprep.subr.bf16.mxu0 %v420_v5  ;;  %v197_v8 = vld [vmem:[%s558_s5 + $0x8] sm:$0xff]  ;;  %v199_v11 = vld [vmem:[%s558_s5 + $0x18] sm:$0xff] }
   0x3   :  { %v34_v3 = vld [vmem:[%s557_s2] sm:$0xff]  ;;  %342 = vmatmul.mubr.msk.f32.vlgmr.msra.gmra.mrb[0].mxu1 %vm39_vm0, %v37_v2  ;;  %388 = vmatprep.subr.bf16.mxu1 %v420_v5  ;;  %v36_v12 = vld [vmem:[%s557_s2 + $0x10] sm:$0xff]  ;;  %v395_v13 = vpack.c.bf16 %v199_v11, %v198_v9  ;;  %v201_v16 = vld [vmem:[%s558_s5 + $0x28] sm:$0xff] }
   0x4   :  { %v389_v6 = vpack.c.bf16 %v35_v4, %v34_v3  ;;  %v196_v7 = vld [vmem:[%s558_s5] sm:$0xff]  ;;  %350 = vmatprep.mubr.msk.f32.mxu1 %vm419_vm1, %v418_v0  ;;  %385 = vmatprep.mubr.msk.f32.mxu0 %vm419_vm1, %v418_v0  ;;  %v202_v18 = vld [vmem:[%s558_s5 + $0x30] sm:$0xff]  ;;  %v203_v19 = vld [vmem:[%s558_s5 + $0x38] sm:$0xff] }
   0x5   :  { %v392_v10 = vpack.c.bf16 %v197_v8, %v196_v7  ;;  %v33_v14 = vld [vmem:[%s559_s0] sm:$0xff]  ;;  %v401_v20 = vpack.c.bf16 %v203_v19, %v202_v18  ;;  %v205_v22 = vld [vmem:[%s558_s5 + $0x48] sm:$0xff]  ;;  %v206_v24 = vld [vmem:[%s558_s5 + $0x50] sm:$0xff] }
   0x6   :  { %390 = vmatpush3.bf16.msra.mxu1 %v389_v6  ;;  %v200_v15 = vld [vmem:[%s558_s5 + $0x20] sm:$0xff]  ;;  %v207_v25 = vld [vmem:[%s558_s5 + $0x58] sm:$0xff]  ;;  %v209_v28 = vld [vmem:[%s558_s5 + $0x68] sm:$0xff] }
   0x7   :  { %348 = vmatprep.subr.mxu1 %v418_v0  ;;  %393 = vmatpush3.bf16.msra.mxu0 %v392_v10  ;;  %v398_v17 = vpack.c.bf16 %v201_v16, %v200_v15  ;;  %v204_v21 = vld [vmem:[%s558_s5 + $0x40] sm:$0xff]  ;;  %v407_v26 = vpack.c.bf16 %v207_v25, %v206_v24  ;;  %v210_v30 = vld [vmem:[%s558_s5 + $0x70] sm:$0xff]  ;;  %v211_v31 = vld [vmem:[%s558_s5 + $0x78] sm:$0xff] }
   0x8   :  { %394 = vmatprep.subr.bf16.mxu0 %v420_v5  ;;  %v404_v23 = vpack.c.bf16 %v205_v22, %v204_v21  ;;  %v208_v27 = vld [vmem:[%s558_s5 + $0x60] sm:$0xff]  ;;  %v413_v32 = vpack.c.bf16 %v211_v31, %v210_v30 }
   0x9   :  { %v410_v29 = vpack.c.bf16 %v209_v28, %v208_v27  ;;  %v313_v36 = vld [vmem:[%s560_s4] ss:$0 sm:$0xff] }
   0xa   :  { %349 = vmatpush3.msra.mxu1 %v36_v12  ;;  %v314_v41 = vld [vmem:[%s561_s6] ss:$0 sm:$0xff] }
   0xb   :  { %351 = vmatmul.mubr.msk.f32.vlgmr.msra.gmra.mrb[2].mxu1 %vm113_vm2, %v33_v14  ;;  %396 = vmatpush3.bf16.msra.mxu0 %v395_v13  ;;  %v315_v45 = vld [vmem:[%s562_s7] ss:$0 sm:$0xff] }
   0xc   :  { %397 = vmatprep.subr.bf16.mxu0 %v420_v5 }
   0xf   :  { %399 = vmatpush3.bf16.msra.mxu0 %v398_v17 }
  0x10   :  { %400 = vmatprep.subr.bf16.mxu0 %v420_v5 }
  0x13   :  { %402 = vmatpush3.bf16.msra.mxu0 %v401_v20 }
  0x14   :  { %403 = vmatprep.subr.bf16.mxu0 %v420_v5 }
  0x17   :  { %405 = vmatpush3.bf16.msra.mxu0 %v404_v23 }
  0x18   :  { %406 = vmatprep.subr.bf16.mxu0 %v420_v5 }
  0x1b   :  { %408 = vmatpush3.bf16.msra.mxu0 %v407_v26 }
  0x1c   :  { %409 = vmatprep.subr.bf16.mxu0 %v420_v5 }
  0x1f   :  { %411 = vmatpush3.bf16.msra.mxu0 %v410_v29 }
  0x20   :  { %412 = vmatprep.subr.bf16.mxu0 %v420_v5 }
  0x23   :  { %414 = vmatpush3.bf16.msra.mxu0 %v413_v32 }
  0xd6   :  { %v109_v33 = vpop.f32.mrb[0].mxu1 }
  0xd7   :  { %v343_v34 = vpop.f32.mrb[1].mxu1 }
  0xde   :  { %v183_v35 = vpop.f32.mrb[2].mxu1 }
  0xdf   :  { %v184_v37 = vadd.f32 %v183_v35, %v109_v33  ;;  %v352_v38 = vpop.f32.mrb[3].mxu1 }
  0xe1   :  { %v194_v39 = vadd.f32 %v313_v36, %v184_v37 }
  0xe3   :  { %v195_v40 = vmax.f32 %v194_v39, 0.0 }
  0xe5   :  { %386 = vmatmul.mubr.f32.vlgmr.msra.gmra.mrb[0].mxu0 %v195_v40 }
 0x1b8   :  { %v285_v42 = vpop.f32.mrb[0].mxu0 }
 0x1b9   :  { %v286_v43 = vadd.f32 %v314_v41, %v285_v42  ;;  %v387_v44 = vpop.f32.mrb[1].mxu0 }
 0x1bb   :  { %v289_v46 = vmax.f32 %v286_v43, 0.0 }
 0x1bd   :  { %v297_v47 = vmul.f32 %v315_v45, %v289_v46 }
 0x1bf   :  { %v299_v48 = vsel %vm298_vm3, %v297_v47, 0.0 }
 0x1c0   :  { %300 = vadd.xlane.f32.xlu0 %v299_v48 }
 0x24d   :  { %v301_v50 = vpop.xlane.xlu0 %300 }
 0x24e   :  { %v304_v51 = vadd.f32 %v303_v49, %v301_v50 }
 0x250   :  { %306 = vst.msk [vmem:[%s564_s9] sm:$0xff] %vm305_vm4, %v304_v51 }

</bundles_post_ra>
